<compile_context>
chip_gen: v5e
topology: v5e:2x2
jax: 0.10.0
libtpu: 0.0.40
codegen_flags: <defaults>
</compile_context>

<pallas_src>
import numpy as np
import jax
import jax.numpy as jnp
from jax.experimental import pallas as pl
from jax.experimental.pallas import tpu as pltpu


# ----------------------------- parameter setup -----------------------------

def dct_mat(size):
    m = [[(np.sqrt(1.0 / size) if i == 0 else np.sqrt(2.0 / size)) *
          np.cos((j + 0.5) * np.pi * i / size) for j in range(size)]
         for i in range(size)]
    return np.asarray(m, dtype=np.float32)


def generate_filter(start, end, size):
    return np.asarray([[0.0 if (i + j > end or i + j < start) else 1.0
                        for j in range(size)] for i in range(size)],
                      dtype=np.float32)


# ------------------------------ Pallas kernel -------------------------------

def fad_fc_kernel(d_ref, dt_ref, filt_t_ref, wt_ref, b_ref, x_ref,
                  y_ref, logit_ref, xfreq_ref, tmp_ref):
    """Grid step = (sample n, frequency band k).

    d_ref, dt_ref : [S, S]        DCT matrix / transpose (matmul dtype)
    filt_t_ref    : [S, S]        band-k filter, pre-transposed, f32
    wt_ref        : [C, classes]  band-k slice of fc weight^T, f32
    b_ref         : [1, classes]  fc bias, f32
    x_ref         : [C, S, S]     sample n (matmul dtype; constant across bands)
    y_ref         : [1, C]        pooled relu+GAP features of (n, band k)
    logit_ref     : [1, classes]  fc output of sample n (resident accumulator)
    xfreq_ref     : [C, S, S] f32 scratch: x_freq^T (computed once per sample)
    tmp_ref       : [C, S, S] f32 scratch: per-channel transposed stacks
    """
    band = pl.program_id(1)
    C, S, _ = x_ref.shape
    CS = C * S
    mm_dtype = d_ref.dtype
    inv_area = 1.0 / float(S * S)

    D = d_ref[...]
    Dt = dt_ref[...]

    # ---- forward DCT, once per sample (band 0):  x_freq^T = D @ x^T @ Dt ----
    # Only stacked right-multiplies on the MXU; the left-multiply is realized
    # via per-channel 2-D transposes (XLU slot, hidden under MXU work).
    @pl.when(band == 0)
    def _():
        x = x_ref[...]
        t = jnp.dot(x.reshape(CS, S), Dt,
                    preferred_element_type=jnp.float32).reshape(C, S, S)
        for c in range(C):                       # static unroll (C is small)
            tmp_ref[c] = t[c].T                  # t[c]^T = D @ x[c]^T
        xfreq_ref[...] = jnp.dot(
            tmp_ref[...].reshape(CS, S).astype(mm_dtype), Dt,
            preferred_element_type=jnp.float32).reshape(C, S, S)

    # ---- band k: filter (f32, VPU) -> inverse DCT -> relu + GAP ----
    # xp^T = filt^T * x_freq^T ; u = xp^T @ D ; u^T = Dt @ xp ; y = u^T @ D
    xp_t = (filt_t_ref[...] * xfreq_ref[...]).astype(mm_dtype)      # [C,S,S]
    u = jnp.dot(xp_t.reshape(CS, S), D,
                preferred_element_type=jnp.float32).reshape(C, S, S)
    for c in range(C):
        tmp_ref[c] = u[c].T                                         # Dt @ xp[c]
    y = jnp.dot(tmp_ref[...].reshape(CS, S).astype(mm_dtype), D,
                preferred_element_type=jnp.float32).reshape(C, S, S)

    # fused _norm_fea: relu -> adaptive_avg_pool2d((1,1))  (all f32, VPU/XLU)
    row_sum = jnp.sum(jnp.maximum(y, 0.0), axis=2)                   # [C, S]
    pooled = jnp.sum(row_sum, axis=1, keepdims=True) * inv_area      # [C, 1]
    y_ref[...] = pooled.T                                            # [1, C]

    # ---- fused fc head: logits = pooled_all_bands @ W^T + b ----
    partial = jnp.sum(pooled * wt_ref[...], axis=0, keepdims=True)   # [1, cls]

    @pl.when(band == 0)
    def _():
        logit_ref[...] = b_ref[...]

    logit_ref[...] += partial


# ------------------------------- JAX wrapper --------------------------------

def f3net_fad_forward(x, D, Dt, filt_t, wt_grouped, bias,
                      *, mm_dtype=jnp.bfloat16):
    """x: [N, C, S, S] f32 -> (pooled FAD features [N, 4C], logits [N, cls])."""
    N, C, S, _ = x.shape
    num_bands = filt_t.shape[0]
    num_classes = wt_grouped.shape[-1]

    grid_spec = pltpu.PrefetchScalarGridSpec(
        num_scalar_prefetch=0,
        grid=(N, num_bands),
        in_specs=[
            pl.BlockSpec((S, S), lambda n, k: (0, 0)),                   # D
            pl.BlockSpec((S, S), lambda n, k: (0, 0)),                   # D^T
            pl.BlockSpec((None, S, S), lambda n, k: (k, 0, 0)),          # filt^T[k]
            pl.BlockSpec((None, C, num_classes), lambda n, k: (k, 0, 0)),# W^T[k]
            pl.BlockSpec((1, num_classes), lambda n, k: (0, 0)),         # bias
            pl.BlockSpec((None, C, S, S), lambda n, k: (n, 0, 0, 0)),    # x[n]
        ],
        out_specs=(
            pl.BlockSpec((None, None, 1, C), lambda n, k: (n, k, 0, 0)), # pooled
            pl.BlockSpec((None, 1, num_classes), lambda n, k: (n, 0, 0)),# logits
        ),
        scratch_shapes=[
            pltpu.VMEM((C, S, S), jnp.float32),   # x_freq^T (per-sample)
            pltpu.VMEM((C, S, S), jnp.float32),   # transposed stack buffer
        ],
    )

    y4, logits = pl.pallas_call(
        fad_fc_kernel,
        out_shape=(jax.ShapeDtypeStruct((N, num_bands, 1, C), jnp.float32),
                   jax.ShapeDtypeStruct((N, 1, num_classes), jnp.float32)),
        grid_spec=grid_spec,
        compiler_params=pltpu.CompilerParams(
            dimension_semantics=("parallel", "arbitrary")),
    )(D.astype(mm_dtype), Dt.astype(mm_dtype), filt_t, wt_grouped, bias,
      x.astype(mm_dtype))

    return y4.reshape(N, num_bands * C), logits.reshape(N, num_classes)


class F3NetPallas:
    """mode='FAD' path of F3Net (FAD_Head + relu/GAP + fc head).

    TODO(synk): Xception / Xception1 / resnet50 backbones and their pretrained
    weights are not defined in the reference source, so the fc head consumes
    the pooled FAD-head features directly.  Dropout(p=0.2) -> identity (eval).
    """

    def __init__(self, num_classes, img_size, key, in_channels=3,
                 mm_dtype=jnp.bfloat16):
        size = img_size
        self.mm_dtype = mm_dtype          # pass jnp.float32 for exact validation
        D = dct_mat(size)
        self._D = jnp.asarray(D)
        self._Dt = jnp.asarray(D.T)

        # FAD_Head filter bands: low / middle / high / all.
        bands = [(0, size // 2.82),
                 (size // 2.82, size // 2),
                 (size // 2, size * 2),
                 (0, size * 2)]
        bases = np.stack([generate_filter(s, e, size) for s, e in bands])

        k_filt, k_w = jax.random.split(key, 2)
        learnable = 0.1 * jax.random.normal(k_filt, (4, size, size),
                                            dtype=jnp.float32)
        # filt = base + norm_sigma(learnable) = base + 2*sigmoid(learnable) - 1
        filt = jnp.asarray(bases) + 2.0 * jax.nn.sigmoid(learnable) - 1.0
        # Pre-transposed per band: the kernel works in the transposed domain and
        # the learnable part is not symmetric, so filt^T must be passed explicitly.
        self._filt_t = jnp.swapaxes(filt, 1, 2)

        # fc head (deterministic synthetic init); in_features adapted to the
        # pooled FAD feature width (Xception backbones unavailable, see TODO).
        feat_dim = 4 * in_channels
        fc_w = 0.02 * jax.random.normal(k_w, (num_classes, feat_dim),
                                        dtype=jnp.float32)
        # W^T grouped per band: [4, C, classes]; row order f*C + c matches
        # torch.cat(dim=1) feature ordering.
        self._wt_grouped = jnp.transpose(fc_w).reshape(4, in_channels,
                                                       num_classes)
        self._fc_b = jnp.zeros((1, num_classes), dtype=jnp.float32)

    def __call__(self, x):
        return f3net_fad_forward(x, self._D, self._Dt, self._filt_t,
                                 self._wt_grouped, self._fc_b,
                                 mm_dtype=self.mm_dtype)

    def reference_forward(self, x):
        """Pure-XLA f32 reference of the same math (for validation)."""
        filt = jnp.swapaxes(self._filt_t, 1, 2)
        D, Dt = self._D, self._Dt
        x_freq = D @ x @ Dt
        pooled = []
        for i in range(filt.shape[0]):
            y_i = Dt @ (filt[i] * x_freq) @ D
            pooled.append(jnp.mean(jnp.maximum(y_i, 0.0), axis=(2, 3)))
        y = jnp.concatenate(pooled, axis=1)
        w_t = self._wt_grouped.reshape(-1, self._wt_grouped.shape[-1])
        f = y @ w_t + self._fc_b
        return y, f


# ----------------------------------- main ------------------------------------

if __name__ == "__main__":
    key = jax.random.PRNGKey(0)
    k_x, k_model = jax.random.split(key)

    N, C, S = 2, 3, 16          # small stand-in for (batch, 3, 256, 256)
    num_classes = 2

    x = jax.random.normal(k_x, (N, C, S, S), dtype=jnp.float32)

    model = F3NetPallas(num_classes=num_classes, img_size=S, key=k_model,
                        in_channels=C)
    y, f = model(x)
    jax.block_until_ready((y, f))

    assert y.shape == (N, 4 * C)
    assert f.shape == (N, num_classes)

    # Validate against the pure-XLA f32 reference (loose tolerance: kernel
    # runs bf16-in / f32-acc on the MXU).
    y_ref, f_ref = model.reference_forward(x)
    jax.block_until_ready((y_ref, f_ref))
    assert float(jnp.max(jnp.abs(y - y_ref))) < 5e-2
    assert float(jnp.max(jnp.abs(f - f_ref))) < 5e-2

    print("KERNEL_OK")
</pallas_src>

<mosaic_0001>
module attributes {stable_mosaic.version = 11 : i64} {
  func.func @fad_fc_kernel(%arg0: i32, %arg1: i32, %arg2: memref<16x16xbf16, #tpu.memory_space<vmem>>, %arg3: memref<16x16xbf16, #tpu.memory_space<vmem>>, %arg4: memref<1x16x16xf32, #tpu.memory_space<vmem>>, %arg5: memref<1x3x2xf32, #tpu.memory_space<vmem>>, %arg6: memref<1x2xf32, #tpu.memory_space<vmem>>, %arg7: memref<1x3x16x16xbf16, #tpu.memory_space<vmem>>, %arg8: memref<1x1x1x3xf32, #tpu.memory_space<vmem>>, %arg9: memref<1x1x2xf32, #tpu.memory_space<vmem>>, %arg10: memref<3x16x16xf32, #tpu.memory_space<vmem>>, %arg11: memref<3x16x16xf32, #tpu.memory_space<vmem>>) attributes {dimension_semantics = [#tpu.dimension_semantics<parallel>, #tpu.dimension_semantics<arbitrary>], iteration_bounds = array<i64: 2, 4>, scalar_prefetch = 0 : i64, scratch_operands = 2 : i64, tpu.core_type = #tpu.core_type<tc>, window_params = [{pipeline_mode = #tpu.pipeline_mode<synchronous>, transform_indices = @transform_0, window_bounds = array<i64: 16, 16>}, {pipeline_mode = #tpu.pipeline_mode<synchronous>, transform_indices = @transform_1, window_bounds = array<i64: 16, 16>}, {transform_indices = @transform_2, window_bounds = array<i64: 1, 16, 16>}, {transform_indices = @transform_3, window_bounds = array<i64: 1, 3, 2>}, {pipeline_mode = #tpu.pipeline_mode<synchronous>, transform_indices = @transform_4, window_bounds = array<i64: 1, 2>}, {transform_indices = @transform_5, window_bounds = array<i64: 1, 3, 16, 16>}, {transform_indices = @transform_6, window_bounds = array<i64: 1, 1, 1, 3>}, {transform_indices = @transform_7, window_bounds = array<i64: 1, 1, 2>}]} {
    %c0 = arith.constant 0 : index
    %c0_0 = arith.constant 0 : index
    %0 = vector.load %arg2[%c0, %c0_0] : memref<16x16xbf16, #tpu.memory_space<vmem>>, vector<16x16xbf16>
    %c0_1 = arith.constant 0 : index
    %c0_2 = arith.constant 0 : index
    %1 = vector.load %arg3[%c0_1, %c0_2] : memref<16x16xbf16, #tpu.memory_space<vmem>>, vector<16x16xbf16>
    %c0_i32 = arith.constant 0 : i32
    %2 = arith.cmpi eq, %arg1, %c0_i32 : i32
    %3 = arith.extui %2 : i1 to i32
    %c0_i32_3 = arith.constant 0 : i32
    %4 = arith.cmpi ne, %3, %c0_i32_3 : i32
    scf.if %4 {
      %c0_41 = arith.constant 0 : index
      %c0_42 = arith.constant 0 : index
      %c0_43 = arith.constant 0 : index
      %c0_44 = arith.constant 0 : index
      %64 = vector.load %arg7[%c0_41, %c0_42, %c0_43, %c0_44] : memref<1x3x16x16xbf16, #tpu.memory_space<vmem>>, vector<1x3x16x16xbf16>
      %65 = vector.shape_cast %64 : vector<1x3x16x16xbf16> to vector<3x16x16xbf16>
      %66 = vector.shape_cast %65 : vector<3x16x16xbf16> to vector<48x16xbf16>
      %cst_45 = arith.constant dense<0.000000e+00> : vector<48x16xf32>
      %67 = tpu.matmul %66, %1, %cst_45 {dimension_numbers = #tpu.dot_dimension_numbers<[1], [0], [0], [1], [0, 0, 1, 1], [], []>} : vector<48x16xbf16>, vector<16x16xbf16>, vector<48x16xf32> -> vector<48x16xf32>
      %68 = vector.shape_cast %67 : vector<48x16xf32> to vector<3x16x16xf32>
      %69 = vector.extract_strided_slice %68 {offsets = [0, 0, 0], sizes = [1, 16, 16], strides = [1, 1, 1]} : vector<3x16x16xf32> to vector<1x16x16xf32>
      %70 = vector.shape_cast %69 : vector<1x16x16xf32> to vector<16x16xf32>
      %71 = tpu.transpose %70, [1, 0] : vector<16x16xf32> -> vector<16x16xf32>
      %c0_46 = arith.constant 0 : index
      %c0_47 = arith.constant 0 : index
      %c0_48 = arith.constant 0 : index
      %72 = vector.load %arg11[%c0_46, %c0_47, %c0_48] : memref<3x16x16xf32, #tpu.memory_space<vmem>>, vector<1x16x16xf32>
      %73 = vector.shape_cast %72 : vector<1x16x16xf32> to vector<16x16xf32>
      %74 = vector.shape_cast %71 : vector<16x16xf32> to vector<1x16x16xf32>
      tpu.vector_store %arg11[%c0_46, %c0_47, %c0_48], %74 {strides = array<i32>} : memref<3x16x16xf32, #tpu.memory_space<vmem>>, vector<1x16x16xf32>,
      %75 = vector.extract_strided_slice %68 {offsets = [1, 0, 0], sizes = [1, 16, 16], strides = [1, 1, 1]} : vector<3x16x16xf32> to vector<1x16x16xf32>
      %76 = vector.shape_cast %75 : vector<1x16x16xf32> to vector<16x16xf32>
      %77 = tpu.transpose %76, [1, 0] : vector<16x16xf32> -> vector<16x16xf32>
      %c1_49 = arith.constant 1 : index
      %c0_50 = arith.constant 0 : index
      %c0_51 = arith.constant 0 : index
      %78 = vector.load %arg11[%c1_49, %c0_50, %c0_51] : memref<3x16x16xf32, #tpu.memory_space<vmem>>, vector<1x16x16xf32>
      %79 = vector.shape_cast %78 : vector<1x16x16xf32> to vector<16x16xf32>
      %80 = vector.shape_cast %77 : vector<16x16xf32> to vector<1x16x16xf32>
      tpu.vector_store %arg11[%c1_49, %c0_50, %c0_51], %80 {strides = array<i32>} : memref<3x16x16xf32, #tpu.memory_space<vmem>>, vector<1x16x16xf32>,
      %81 = vector.extract_strided_slice %68 {offsets = [2, 0, 0], sizes = [1, 16, 16], strides = [1, 1, 1]} : vector<3x16x16xf32> to vector<1x16x16xf32>
      %82 = vector.shape_cast %81 : vector<1x16x16xf32> to vector<16x16xf32>
      %83 = tpu.transpose %82, [1, 0] : vector<16x16xf32> -> vector<16x16xf32>
      %c2_52 = arith.constant 2 : index
      %c0_53 = arith.constant 0 : index
      %c0_54 = arith.constant 0 : index
      %84 = vector.load %arg11[%c2_52, %c0_53, %c0_54] : memref<3x16x16xf32, #tpu.memory_space<vmem>>, vector<1x16x16xf32>
      %85 = vector.shape_cast %84 : vector<1x16x16xf32> to vector<16x16xf32>
      %86 = vector.shape_cast %83 : vector<16x16xf32> to vector<1x16x16xf32>
      tpu.vector_store %arg11[%c2_52, %c0_53, %c0_54], %86 {strides = array<i32>} : memref<3x16x16xf32, #tpu.memory_space<vmem>>, vector<1x16x16xf32>,
      %c0_55 = arith.constant 0 : index
      %c0_56 = arith.constant 0 : index
      %c0_57 = arith.constant 0 : index
      %87 = vector.load %arg11[%c0_55, %c0_56, %c0_57] : memref<3x16x16xf32, #tpu.memory_space<vmem>>, vector<3x16x16xf32>
      %88 = vector.shape_cast %87 : vector<3x16x16xf32> to vector<48x16xf32>
      %89 = arith.truncf %88 : vector<48x16xf32> to vector<48x16xbf16>
      %cst_58 = arith.constant dense<0.000000e+00> : vector<48x16xf32>
      %90 = tpu.matmul %89, %1, %cst_58 {dimension_numbers = #tpu.dot_dimension_numbers<[1], [0], [0], [1], [0, 0, 1, 1], [], []>} : vector<48x16xbf16>, vector<16x16xbf16>, vector<48x16xf32> -> vector<48x16xf32>
      %91 = vector.shape_cast %90 : vector<48x16xf32> to vector<3x16x16xf32>
      %c0_59 = arith.constant 0 : index
      %c0_60 = arith.constant 0 : index
      %c0_61 = arith.constant 0 : index
      %92 = vector.load %arg10[%c0_59, %c0_60, %c0_61] : memref<3x16x16xf32, #tpu.memory_space<vmem>>, vector<3x16x16xf32>
      tpu.vector_store %arg10[%c0_59, %c0_60, %c0_61], %91 {strides = array<i32>} : memref<3x16x16xf32, #tpu.memory_space<vmem>>, vector<3x16x16xf32>,
    } else {
    }
    %c0_4 = arith.constant 0 : index
    %c0_5 = arith.constant 0 : index
    %c0_6 = arith.constant 0 : index
    %5 = vector.load %arg4[%c0_4, %c0_5, %c0_6] : memref<1x16x16xf32, #tpu.memory_space<vmem>>, vector<1x16x16xf32>
    %6 = vector.shape_cast %5 : vector<1x16x16xf32> to vector<16x16xf32>
    %c0_7 = arith.constant 0 : index
    %c0_8 = arith.constant 0 : index
    %c0_9 = arith.constant 0 : index
    %7 = vector.load %arg10[%c0_7, %c0_8, %c0_9] : memref<3x16x16xf32, #tpu.memory_space<vmem>>, vector<3x16x16xf32>
    %8 = vector.shape_cast %6 : vector<16x16xf32> to vector<1x16x16xf32>
    %9 = vector.broadcast %8 : vector<1x16x16xf32> to vector<3x16x16xf32>
    %10 = arith.mulf %9, %7 : vector<3x16x16xf32>
    %11 = arith.truncf %10 : vector<3x16x16xf32> to vector<3x16x16xbf16>
    %12 = vector.shape_cast %11 : vector<3x16x16xbf16> to vector<48x16xbf16>
    %cst = arith.constant dense<0.000000e+00> : vector<48x16xf32>
    %13 = tpu.matmul %12, %0, %cst {dimension_numbers = #tpu.dot_dimension_numbers<[1], [0], [0], [1], [0, 0, 1, 1], [], []>} : vector<48x16xbf16>, vector<16x16xbf16>, vector<48x16xf32> -> vector<48x16xf32>
    %14 = vector.shape_cast %13 : vector<48x16xf32> to vector<3x16x16xf32>
    %15 = vector.extract_strided_slice %14 {offsets = [0, 0, 0], sizes = [1, 16, 16], strides = [1, 1, 1]} : vector<3x16x16xf32> to vector<1x16x16xf32>
    %16 = vector.shape_cast %15 : vector<1x16x16xf32> to vector<16x16xf32>
    %17 = tpu.transpose %16, [1, 0] : vector<16x16xf32> -> vector<16x16xf32>
    %c0_10 = arith.constant 0 : index
    %c0_11 = arith.constant 0 : index
    %c0_12 = arith.constant 0 : index
    %18 = vector.load %arg11[%c0_10, %c0_11, %c0_12] : memref<3x16x16xf32, #tpu.memory_space<vmem>>, vector<1x16x16xf32>
    %19 = vector.shape_cast %18 : vector<1x16x16xf32> to vector<16x16xf32>
    %20 = vector.shape_cast %17 : vector<16x16xf32> to vector<1x16x16xf32>
    tpu.vector_store %arg11[%c0_10, %c0_11, %c0_12], %20 {strides = array<i32>} : memref<3x16x16xf32, #tpu.memory_space<vmem>>, vector<1x16x16xf32>,
    %21 = vector.extract_strided_slice %14 {offsets = [1, 0, 0], sizes = [1, 16, 16], strides = [1, 1, 1]} : vector<3x16x16xf32> to vector<1x16x16xf32>
    %22 = vector.shape_cast %21 : vector<1x16x16xf32> to vector<16x16xf32>
    %23 = tpu.transpose %22, [1, 0] : vector<16x16xf32> -> vector<16x16xf32>
    %c1 = arith.constant 1 : index
    %c0_13 = arith.constant 0 : index
    %c0_14 = arith.constant 0 : index
    %24 = vector.load %arg11[%c1, %c0_13, %c0_14] : memref<3x16x16xf32, #tpu.memory_space<vmem>>, vector<1x16x16xf32>
    %25 = vector.shape_cast %24 : vector<1x16x16xf32> to vector<16x16xf32>
    %26 = vector.shape_cast %23 : vector<16x16xf32> to vector<1x16x16xf32>
    tpu.vector_store %arg11[%c1, %c0_13, %c0_14], %26 {strides = array<i32>} : memref<3x16x16xf32, #tpu.memory_space<vmem>>, vector<1x16x16xf32>,
    %27 = vector.extract_strided_slice %14 {offsets = [2, 0, 0], sizes = [1, 16, 16], strides = [1, 1, 1]} : vector<3x16x16xf32> to vector<1x16x16xf32>
    %28 = vector.shape_cast %27 : vector<1x16x16xf32> to vector<16x16xf32>
    %29 = tpu.transpose %28, [1, 0] : vector<16x16xf32> -> vector<16x16xf32>
    %c2 = arith.constant 2 : index
    %c0_15 = arith.constant 0 : index
    %c0_16 = arith.constant 0 : index
    %30 = vector.load %arg11[%c2, %c0_15, %c0_16] : memref<3x16x16xf32, #tpu.memory_space<vmem>>, vector<1x16x16xf32>
    %31 = vector.shape_cast %30 : vector<1x16x16xf32> to vector<16x16xf32>
    %32 = vector.shape_cast %29 : vector<16x16xf32> to vector<1x16x16xf32>
    tpu.vector_store %arg11[%c2, %c0_15, %c0_16], %32 {strides = array<i32>} : memref<3x16x16xf32, #tpu.memory_space<vmem>>, vector<1x16x16xf32>,
    %c0_17 = arith.constant 0 : index
    %c0_18 = arith.constant 0 : index
    %c0_19 = arith.constant 0 : index
    %33 = vector.load %arg11[%c0_17, %c0_18, %c0_19] : memref<3x16x16xf32, #tpu.memory_space<vmem>>, vector<3x16x16xf32>
    %34 = vector.shape_cast %33 : vector<3x16x16xf32> to vector<48x16xf32>
    %35 = arith.truncf %34 : vector<48x16xf32> to vector<48x16xbf16>
    %cst_20 = arith.constant dense<0.000000e+00> : vector<48x16xf32>
    %36 = tpu.matmul %35, %0, %cst_20 {dimension_numbers = #tpu.dot_dimension_numbers<[1], [0], [0], [1], [0, 0, 1, 1], [], []>} : vector<48x16xbf16>, vector<16x16xbf16>, vector<48x16xf32> -> vector<48x16xf32>
    %37 = vector.shape_cast %36 : vector<48x16xf32> to vector<3x16x16xf32>
    %cst_21 = arith.constant 0.000000e+00 : f32
    %38 = vector.broadcast %cst_21 : f32 to vector<3x16x16xf32>
    %39 = arith.maximumf %37, %38 : vector<3x16x16xf32>
    %cst_22 = arith.constant dense<0.000000e+00> : vector<3x16xf32>
    %40 = vector.multi_reduction <add>, %39, %cst_22 [2] : vector<3x16x16xf32> to vector<3x16xf32>
    %cst_23 = arith.constant dense<0.000000e+00> : vector<3xf32>
    %41 = vector.multi_reduction <add>, %40, %cst_23 [1] : vector<3x16xf32> to vector<3xf32>
    %42 = vector.shape_cast %41 : vector<3xf32> to vector<3x1xf32>
    %cst_24 = arith.constant 3.906250e-03 : f32
    %43 = vector.broadcast %cst_24 : f32 to vector<3x1xf32>
    %44 = arith.mulf %42, %43 : vector<3x1xf32>
    %45 = tpu.transpose %44, [1, 0] : vector<3x1xf32> -> vector<1x3xf32>
    %c0_25 = arith.constant 0 : index
    %c0_26 = arith.constant 0 : index
    %c0_27 = arith.constant 0 : index
    %c0_28 = arith.constant 0 : index
    %46 = vector.load %arg8[%c0_25, %c0_26, %c0_27, %c0_28] : memref<1x1x1x3xf32, #tpu.memory_space<vmem>>, vector<1x1x1x3xf32>
    %47 = vector.shape_cast %46 : vector<1x1x1x3xf32> to vector<1x3xf32>
    %48 = vector.shape_cast %45 : vector<1x3xf32> to vector<1x1x1x3xf32>
    tpu.vector_store %arg8[%c0_25, %c0_26, %c0_27, %c0_28], %48 {strides = array<i32>} : memref<1x1x1x3xf32, #tpu.memory_space<vmem>>, vector<1x1x1x3xf32>,
    %c0_29 = arith.constant 0 : index
    %c0_30 = arith.constant 0 : index
    %c0_31 = arith.constant 0 : index
    %49 = vector.load %arg5[%c0_29, %c0_30, %c0_31] : memref<1x3x2xf32, #tpu.memory_space<vmem>>, vector<1x3x2xf32>
    %50 = vector.shape_cast %49 : vector<1x3x2xf32> to vector<3x2xf32>
    %51 = vector.broadcast %44 : vector<3x1xf32> to vector<3x2xf32>
    %52 = arith.mulf %51, %50 : vector<3x2xf32>
    %cst_32 = arith.constant dense<0.000000e+00> : vector<2xf32>
    %53 = vector.multi_reduction <add>, %52, %cst_32 [0] : vector<3x2xf32> to vector<2xf32>
    %54 = vector.shape_cast %53 : vector<2xf32> to vector<1x2xf32>
    %c0_i32_33 = arith.constant 0 : i32
    %55 = arith.cmpi eq, %arg1, %c0_i32_33 : i32
    %56 = arith.extui %55 : i1 to i32
    %c0_i32_34 = arith.constant 0 : i32
    %57 = arith.cmpi ne, %56, %c0_i32_34 : i32
    scf.if %57 {
      %c0_41 = arith.constant 0 : index
      %c0_42 = arith.constant 0 : index
      %64 = vector.load %arg6[%c0_41, %c0_42] : memref<1x2xf32, #tpu.memory_space<vmem>>, vector<1x2xf32>
      %c0_43 = arith.constant 0 : index
      %c0_44 = arith.constant 0 : index
      %c0_45 = arith.constant 0 : index
      %65 = vector.load %arg9[%c0_43, %c0_44, %c0_45] : memref<1x1x2xf32, #tpu.memory_space<vmem>>, vector<1x1x2xf32>
      %66 = vector.shape_cast %65 : vector<1x1x2xf32> to vector<1x2xf32>
      %67 = vector.shape_cast %64 : vector<1x2xf32> to vector<1x1x2xf32>
      tpu.vector_store %arg9[%c0_43, %c0_44, %c0_45], %67 {strides = array<i32>} : memref<1x1x2xf32, #tpu.memory_space<vmem>>, vector<1x1x2xf32>,
    } else {
    }
    %c0_35 = arith.constant 0 : index
    %c0_36 = arith.constant 0 : index
    %c0_37 = arith.constant 0 : index
    %58 = vector.load %arg9[%c0_35, %c0_36, %c0_37] : memref<1x1x2xf32, #tpu.memory_space<vmem>>, vector<1x1x2xf32>
    %59 = vector.shape_cast %58 : vector<1x1x2xf32> to vector<1x2xf32>
    %60 = arith.addf %59, %54 : vector<1x2xf32>
    %c0_38 = arith.constant 0 : index
    %c0_39 = arith.constant 0 : index
    %c0_40 = arith.constant 0 : index
    %61 = vector.load %arg9[%c0_38, %c0_39, %c0_40] : memref<1x1x2xf32, #tpu.memory_space<vmem>>, vector<1x1x2xf32>
    %62 = vector.shape_cast %61 : vector<1x1x2xf32> to vector<1x2xf32>
    %63 = vector.shape_cast %60 : vector<1x2xf32> to vector<1x1x2xf32>
    tpu.vector_store %arg9[%c0_38, %c0_39, %c0_40], %63 {strides = array<i32>} : memref<1x1x2xf32, #tpu.memory_space<vmem>>, vector<1x1x2xf32>,
    return
  }
  func.func @transform_0(%arg0: i32, %arg1: i32) -> (i32, i32) {
    %c0_i32 = arith.constant 0 : i32
    %c0_i32_0 = arith.constant 0 : i32
    %c0_i32_1 = arith.constant 0 : i32
    return %c0_i32, %c0_i32_0 : i32, i32
  }
  func.func @transform_1(%arg0: i32, %arg1: i32) -> (i32, i32) {
    %c0_i32 = arith.constant 0 : i32
    %c0_i32_0 = arith.constant 0 : i32
    %c0_i32_1 = arith.constant 0 : i32
    return %c0_i32, %c0_i32_0 : i32, i32
  }
  func.func @transform_2(%arg0: i32, %arg1: i32) -> (i32, i32, i32) {
    %c0_i32 = arith.constant 0 : i32
    %c0_i32_0 = arith.constant 0 : i32
    %c0_i32_1 = arith.constant 0 : i32
    return %arg1, %c0_i32, %c0_i32_0 : i32, i32, i32
  }
  func.func @transform_3(%arg0: i32, %arg1: i32) -> (i32, i32, i32) {
    %c0_i32 = arith.constant 0 : i32
    %c0_i32_0 = arith.constant 0 : i32
    %c0_i32_1 = arith.constant 0 : i32
    return %arg1, %c0_i32, %c0_i32_0 : i32, i32, i32
  }
  func.func @transform_4(%arg0: i32, %arg1: i32) -> (i32, i32) {
    %c0_i32 = arith.constant 0 : i32
    %c0_i32_0 = arith.constant 0 : i32
    %c0_i32_1 = arith.constant 0 : i32
    return %c0_i32, %c0_i32_0 : i32, i32
  }
  func.func @transform_5(%arg0: i32, %arg1: i32) -> (i32, i32, i32, i32) {
    %c0_i32 = arith.constant 0 : i32
    %c0_i32_0 = arith.constant 0 : i32
    %c0_i32_1 = arith.constant 0 : i32
    %c0_i32_2 = arith.constant 0 : i32
    return %arg0, %c0_i32, %c0_i32_0, %c0_i32_1 : i32, i32, i32, i32
  }
  func.func @transform_6(%arg0: i32, %arg1: i32) -> (i32, i32, i32, i32) {
    %c0_i32 = arith.constant 0 : i32
    %c0_i32_0 = arith.constant 0 : i32
    %c0_i32_1 = arith.constant 0 : i32
    return %arg0, %arg1, %c0_i32, %c0_i32_0 : i32, i32, i32, i32
  }
  func.func @transform_7(%arg0: i32, %arg1: i32) -> (i32, i32, i32) {
    %c0_i32 = arith.constant 0 : i32
    %c0_i32_0 = arith.constant 0 : i32
    %c0_i32_1 = arith.constant 0 : i32
    return %arg0, %c0_i32, %c0_i32_0 : i32, i32, i32
  }
}

</mosaic_0001>

<bundles_post_ra>
// kernel: tpu_custom_call.1
= control target key start
LH: loop header
LB: loop body
LE: loop exit
PB: predicated region body
PF: predicated region fallthrough
CT: control target
= control target key end

     0   :  { %s1830_s0 = inlined_call_operand.vmem [shape: bf16[16,16], index: 0, kind: input, shape index: {}]   ;;  %s1831_s1 = inlined_call_operand.vmem [shape: bf16[16,16], index: 1, kind: input, shape index: {}]   ;;  %s1832_s2 = inlined_call_operand.hbm [shape: f32[4,16,16], index: 2, kind: input, shape index: {}]   ;;  %s1833_s3 = inlined_call_operand.vmem [shape: f32[4,3,2], index: 3, kind: input, shape index: {}]   ;;  %s1834_s4 = inlined_call_operand.vmem [shape: f32[1,2], index: 4, kind: input, shape index: {}]   ;;  %s1835_s5 = inlined_call_operand.hbm [shape: bf16[2,3,16,16], index: 5, kind: input, shape index: {}]   ;;  %s1836_s6 = inlined_call_operand.vmem [shape: f32[2,4,1,3], index: 6, kind: output, shape index: {0}]   ;;  %s1837_s7 = inlined_call_operand.hbm [shape: f32[2,1,2], index: 7, kind: output, shape index: {1}]  }
   0x1   :  { %1847 = sst [smem:[#allocation20_spill]] %s1832_s2 }
   0x2   :  { %1848 = sst [smem:[#allocation21_spill]] %s1834_s4 }
   0x3   :  { %1849 = sst [smem:[#allocation22_spill]] %s1837_s7 }
   0x4   :  { %13 = vsyncpa [#allocation5], 0 }
   0x5   :  { %15 = vsyncpa [#allocation5 + $0x1], 0 }
   0x6   :  { %16 = vsyncpa [#allocation8], 0 }
   0x7   :  { %18 = vsyncpa [#allocation8 + $0x1], 0 }
   0x8   :  { %19 = vsyncpa [#allocation6], 0 }
   0x9   :  { %21 = vsyncpa [#allocation6 + $0x1], 0  ;;  %s1510_s24 = smov 0   ;;  %s1512_s25 = smov 0  }
   0xa   :  { %s1514_s26 = smov 0   ;;  %s1516_s27 = smov 0  }
   0xb   :  { %s1518_s28 = smov 0   ;;  %s1520_s29 = smov 0  }
   0xc   :  { %s1522_s30 = smov 0   ;;  %s1524_s8 = smov 0  }
   0xd   :  { %s1526_s9 = smov 0   ;;  %s1528_s10 = smov 0  }
   0xe   :  { %s1530_s11 = smov 0  }
   0xf LB: > { %1850 = sst [smem:[#allocation13_spill]] %s1424_s24  ;;  %s1838_s12 = sadd.s32 4294967295, %s1464_s11   ;;  %s1464_s11 = sphi %s1530_s11, %s27_s11   ;;  %s1460_s10 = sphi %s1528_s10, %s1886_s10   ;;  %s1456_s9 = sphi %s1526_s9, %s1878_s9   ;;  %s1452_s8 = sphi %s1524_s8, %s1885_s8   ;;  %s1448_s30 = sphi %s1522_s30, %s1877_s30   ;;  %s1444_s29 = sphi %s1520_s29, %s1876_s29   ;;  %s1440_s28 = sphi %s1518_s28, %s1884_s28   ;;  %s1436_s27 = sphi %s1516_s27, %s1883_s27   ;;  %s1432_s26 = sphi %s1514_s26, %s1882_s26   ;;  %s1428_s25 = sphi %s1512_s25, %s1881_s25   ;;  %s1424_s24 = sphi %s1510_s24, %s1880_s24  }
  0x10   : > { %1851 = sst [smem:[#allocation14_spill]] %s1444_s29  ;;  %s36_s13 = sadd.s32 1, %s1456_s9 }
  0x11   : > { %1852 = sst [smem:[#allocation15_spill]] %s1456_s9  ;;  %p1565_p0 = scmp.ge.s32.totalorder %s36_s13, 4 }
  0x12   : > { %s88_s15 = sadd.s32 1, %s1444_s29  ;;  %p95_p1 = scmp.ne.s32.totalorder %s1444_s29, %s1440_s28 }
  0x13   : > { %p96_p2 = scmp.eq.s32.totalorder %s1464_s11, 0  ;;  %s1888_s13 = smov (%p1565_p0, %s36_s13), 0 }
  0x14   : > { %1854 = sst [smem:[#allocation16_spill]] %s1888_s13  ;;  %p101_p4 = scmp.ne.s32.totalorder %s1440_s28, %s1436_s27 }
  0x15   : > { %p1579_p3 = por %p96_p2, %p95_p1  ;;  %s85_s17 = ssub.s32 %s1456_s9, %s1888_s13 }
  0x16   : > { %p1588_p5 = scmp.eq.s32.totalorder %s1838_s12, 0  ;;  %p86_p6 = scmp.eq.s32.totalorder %s85_s17, 0 }
  0x17   : > { %p1182_p8 = scmp.lt.s32.totalorder %s1464_s11, 8  ;;  %s261_s21 = sand.u32 1, %s1444_s29  }
  0x18   : > { %p1594_p7 = por %p1588_p5, %p101_p4  ;;  %s1152_s22 = sshll.u32 %s1456_s9, 4 }
  0x19   : > { %s1600_s20 = scalar_select %p86_p6, %s1444_s29, %s88_s15  }
  0x1a   : > { %s1108_s23 = sshll.u32 %s261_s21, 4  ;;  %s1859_s2 = sld [smem:[#allocation20_spill]] }
  0x1b   : > { %1858 = sst [smem:[#allocation17_spill]] %s1600_s20  ;;  %s265_s17 = scalar_lea.vmem [#allocation4], %s1108_s23 }
  0x1c   : > { %s273_s4 = sshll.u32 %s265_s17, 4  ;;  %p1172_p9 = pnand %p1182_p8, %p1579_p3  ;;  %s274_s4 = int_to_ptr.vmem [resolvable:$true] %s273_s4 }
  0x1d   : > { %p1112_p10 = scmp.ge.s32.totalorder %s1464_s11, 1  ;;  %p310_p11 = scmp.lt.s32.totalorder %s1464_s11, 9 }
  0x1e   : > { %s262_s12 = scalar_lea.sflag [#allocation5], %s261_s21  ;;  %s1467_s15 = smov 8  }
  0x1f   : > { %p1613_p12 = pnand %p1112_p10, %p310_p11  ;;  %s1105_s23 = sadd.s32 4294967294, %s1464_s11  }
  0x20   : > { %s270_s13 = scalar_lea.hbm %s1859_s2, %s1152_s22  ;;  %s39_s27 = sadd.s32 1, %s1460_s10 }
  0x21   : > { %s271_s7 = sshll.u32 %s270_s13, 4  ;;  %s1466_s13 = smov 128   ;;  %s272_s7 = int_to_ptr.hbm [resolvable:$true] %s271_s7 }
  0x22   : > { %1174 = dma.hbm_to_vmem [thread:$0]  (!%p1172_p9), %s272_s7, 256, %s274_s4, %s262_s12, %s1466_s13, %s1466_s13, %s1467_s15  }
  0x23   : > { %s161_s16 = sadd.s32 1, %s1432_s26  ;;  %s1890_s27 = smov (!%p1565_p0, %s39_s27), %s1460_s10 }
  0x24   : > { %p168_p13 = scmp.ne.s32.totalorder %s1432_s26, %s1428_s25  ;;  %p174_p1 = scmp.ne.s32.totalorder %s1428_s25, %s1424_s24 }
  0x25   : > { %p41_p3 = scmp.ge.s32.totalorder %s1890_s27, 2  ;;  %s1861_s21 = sadd.s32 4294967295, %s1464_s11  }
  0x26   : > { %p226_p4 = scmp.eq.s32.totalorder %s1861_s21, 7  ;;  %p1631_p6 = por %p168_p13, %p96_p2 }
  0x27   : > { %p1637_p9 = por %p174_p1, %p1588_p5  ;;  %s1892_s27 = smov (%p41_p3, %s1890_s27), 0 }
  0x28   : > { %1864 = sst [smem:[#allocation18_spill]] %s1892_s27  ;;  %p1643_p0 = por %p226_p4, %p168_p13 }
  0x29   : > { %p232_p10 = scmp.eq.s32.totalorder %s1105_s23, 7  ;;  %s158_s17 = ssub.s32 %s1460_s10, %s1892_s27 }
  0x2a   : > { %s1865_s14 = scalar_select %p1643_p0, 1, 0 }
  0x2b   : > { %s290_s12 = sand.u32 1, %s1432_s26   ;;  %p159_p2 = scmp.eq.s32.totalorder %s158_s17, 0 }
  0x2c   : > { %1866 = sst [smem:[#allocation19_spill]] %s1865_s14  ;;  %p1650_p11 = por %p232_p10, %p174_p1 }
  0x2d   : > { %s1162_s18 = smul.u32 24, %s290_s12  ;;  %p1175_p5 = pnand %p1182_p8, %p1631_p6 }
  0x2e   : > { %s1655_s15 = scalar_select %p159_p2, %s1432_s26, %s161_s16  }
  0x2f   : > { %s1163_s21 = smul.u32 24, %s1460_s10  ;;  %s294_s2 = scalar_lea.vmem [#allocation7], %s1162_s18 }
  0x30   : > { %s302_s9 = sshll.u32 %s294_s2, 4  ;;  %s291_s17 = scalar_lea.sflag [#allocation8], %s290_s12  ;;  %s303_s9 = int_to_ptr.vmem [resolvable:$true] %s302_s9 }
  0x31   : > { %s299_s23 = scalar_lea.hbm %s1835_s5, %s1163_s21  ;;  %s1468_s24 = smov 64  }
  0x32   : > { %s300_s27 = sshll.u32 %s299_s23, 4  ;;  %s1469_s14 = smov 4   ;;  %s301_s27 = int_to_ptr.hbm [resolvable:$true] %s300_s27 }
  0x33   : > { %1177 = dma.hbm_to_vmem [thread:$0]  (!%p1175_p5), %s301_s27, 384, %s303_s9, %s291_s17, %s1468_s24, %s1468_s24, %s1469_s14  }
  0x34   : > { %314 = sbr.rel (%p1613_p12) target bundleno = 1450 (0x5aa), region = 44  ;;  %s316_s2 = sand.u32 (!%p1613_p12), 1, %s1440_s28  }
  0x35   : > { %s1668_s16 = sshll.u32 (!%p1613_p12), %s316_s2, 4  ;;  %s317_s4 = scalar_lea.sflag (!%p1613_p12), [#allocation5], %s316_s2 }
  0x39   : > { %1411 = dma.done.wait (%p1594_p7), %s317_s4, 256  }
  0x3a   : > { %1413 = vsyncadd (%p1594_p7), %s317_s4, 4294967040  ;;  %s1676_s29 = sand.u32 1, %s1428_s25  }
  0x3b   : > { %s1164_s24 = smul.u32 24, %s1676_s29  ;;  %s327_s9 = scalar_lea.sflag [#allocation8], %s1676_s29 }
  0x3d   : > { %s330_s20 = scalar_lea.vmem [#allocation7], %s1164_s24 }
  0x3e   : > { %1415 = dma.done.wait (%p1637_p9), %s327_s9, 384  }
  0x3f   : > { %1417 = vsyncadd (%p1637_p9), %s327_s9, 4294966912  ;;  %p377_p7 = scmp.lt.s32.totalorder %s1448_s30, 3  ;;  %p381_p8 = scmp.lt.s32.totalorder %s1452_s8, 1  ;;  %v1698_v0 = vld [vmem:[%s1830_s0] sm:$0xf] }
  0x40   : > { %v1703_v1 = vld [vmem:[%s1830_s0] sm:$0xf0]  ;;  %v1131_v2 = vld [vmem:[%s1831_s1] sm:$0xf]  ;;  %p1116_p12 = scmp.ne.s32.totalorder %s1448_s30, 0 }
  0x41   : > { %s378_s19 = scalar_select %p377_p7, %s1448_s30, 3  ;;  %v1154_v3 = vld [vmem:[%s1831_s1] sm:$0xf0] }
  0x42   : > { %s382_s22 = scalar_select %p381_p8, %s1452_s8, 1 }
  0x43   : > { %s1114_s27 = sshll.u32 %s378_s19, 2  ;;  %396 = sbr.rel (%p1116_p12) target bundleno = 549 (0x225), region = 56 }
  0x44   : > { %s1691_s21 = scalar_lea.vmem %s1833_s3, %s1114_s27  ;;  %s1115_s23 = sshll.u32 %s382_s22, 2 }
  0x45   : > { %s1693_s17 = sadd.s32 %s1115_s23, %s378_s19  ;;  %s1716_s23 = scalar_lea.vmem [#allocation9], %s1676_s29 }
  0x46   : > { %s387_s19 = scalar_lea.vmem %s1836_s6, %s1693_s17 }
  0x48   : > { %v1132_v4 = vor.u32 %v1154_v3, %v1131_v2  ;;  %v1156_v5 = vld [vmem:[%s330_s20 + $0x8] sm:$0xff]  ;;  %v1155_v6 = vld [vmem:[%s330_s20] sm:$0xff]  ;;  %vm424_vm0 = vcmask 130048   ;;  %v1157_v7 = vld [vmem:[%s330_s20 + $0x10] sm:$0xff] }
  0x4a   : > { %1158 = vmatpush.bf16.msra.mxu2 %v1132_v4  ;;  %441 = vmatpush.bf16.msra.mxu0 %v1132_v4 }
  0x4b   : > { %1159 = vmatpush.bf16.msra.mxu3 %v1132_v4  ;;  %587 = vmatpush.bf16.msra.mxu1 %v1132_v4 }
  0x4d   : > { %1134 = vmatmul.msk.bf16.vlgmr.msra.gmra.mxu2 %vm424_vm0, %v1156_v5  ;;  %1133 = vmatmul.msk.bf16.vlgmr.msra.gmra.mxu0 %vm424_vm0, %v1155_v6 }
  0x5d   : > { %1135 = vmatmul.msk.bf16.gmra.mxu2 %vm424_vm0, %v1157_v7 }
  0xca   : > { %v443_v8 = vpop.f32.mrf.mxu0 }
  0xcb   : > { %458 = vxpose.xlu2.b32.start [1/2] (short) (narrow) %v443_v8, 16 }
  0xd0   : > { %v448_v9 = vpop.f32.mrf.mxu2 }
  0xd1   : > { %492 = vxpose.xlu0.b32.start [1/2] (short) (narrow) %v448_v9, 16 }
  0xd2   : > { %v445_v10 = vpop.f32.mrf.mxu0 }
  0xd3   : > { %459 = vxpose.xlu2.b32.end [2/2] (short) (narrow) %v445_v10, 16 }
  0xd8   : > { %v450_v11 = vpop.f32.mrf.mxu2 }
  0xd9   : > { %493 = vxpose.xlu0.b32.end [2/2] (short) (narrow) %v450_v11, 16 }
  0xe0   : > { %v453_v12 = vpop.f32.mrf.mxu2 }
  0xe1   : > { %527 = vxpose.xlu1.b32.start [1/2] (short) (narrow) %v453_v12, 16 }
  0xe8   : > { %v455_v13 = vpop.f32.mrf.mxu2 }
  0xe9   : > { %528 = vxpose.xlu1.b32.end [2/2] (short) (narrow) %v455_v13, 16 }
 0x164   : > { %v474_v14 = vpop.trf.xlu2 }
 0x165   : > { %490 = vst.msk [vmem:[#allocation3] sm:$0xff] %vm424_vm0, %v474_v14 }
 0x16c   : > { %v475_v15 = vpop.trf.xlu2  ;;  %v562_v16 = vld [vmem:[#allocation3] sm:$0xff] }
 0x16d   : > { %491 = vst.msk [vmem:[#allocation3 + $0x8] sm:$0xff] %vm424_vm0, %v475_v15 }
 0x174   : > { %v563_v17 = vld [vmem:[#allocation3 + $0x8] sm:$0xff] }
 0x175   : > { %v508_v18 = vpop.trf.xlu0  ;;  %v568_v19 = vpack.c.bf16 %v563_v17, %v562_v16 }
 0x176   : > { %525 = vst.msk [vmem:[#allocation3 + $0x10] sm:$0xff] %vm424_vm0, %v508_v18 }
 0x177   : > { %1136 = vmatmul.msk.bf16.vlgmr.msra.gmra.mxu1 %vm424_vm0, %v568_v19 }
 0x17d   : > { %v509_v20 = vpop.trf.xlu0  ;;  %v564_v22 = vld [vmem:[#allocation3 + $0x10] sm:$0xff] }
 0x17e   : > { %526 = vst.msk [vmem:[#allocation3 + $0x18] sm:$0xff] %vm424_vm0, %v509_v20 }
 0x185   : > { %v543_v21 = vpop.trf.xlu1  ;;  %v565_v23 = vld [vmem:[#allocation3 + $0x18] sm:$0xff] }
 0x186   : > { %560 = vst.msk [vmem:[#allocation3 + $0x20] sm:$0xff] %vm424_vm0, %v543_v21  ;;  %v569_v24 = vpack.c.bf16 %v565_v23, %v564_v22 }
 0x188   : > { %1137 = vmatmul.msk.bf16.vlgmr.msra.gmra.mxu3 %vm424_vm0, %v569_v24 }
 0x18d   : > { %v544_v25 = vpop.trf.xlu1  ;;  %v566_v26 = vld [vmem:[#allocation3 + $0x20] sm:$0xff] }
 0x18e   : > { %561 = vst.msk [vmem:[#allocation3 + $0x28] sm:$0xff] %vm424_vm0, %v544_v25 }
 0x195   : > { %v567_v27 = vld [vmem:[#allocation3 + $0x28] sm:$0xff] }
 0x196   : > { %v570_v28 = vpack.c.bf16 %v567_v27, %v566_v26 }
 0x198   : > { %1138 = vmatmul.msk.bf16.gmra.mxu3 %vm424_vm0, %v570_v28 }
 0x1f4   : > { %v589_v29 = vpop.f32.mrf.mxu1 }
 0x1f5   : > { %604 = vst.msk [vmem:[#allocation2] sm:$0xff] %vm424_vm0, %v589_v29 }
 0x1fc   : > { %v591_v30 = vpop.f32.mrf.mxu1 }
 0x1fd   : > { %605 = vst.msk [vmem:[#allocation2 + $0x8] sm:$0xff] %vm424_vm0, %v591_v30 }
 0x20b   : > { %v594_v31 = vpop.f32.mrf.mxu3 }
 0x20c   : > { %606 = vst.msk [vmem:[#allocation2 + $0x10] sm:$0xff] %vm424_vm0, %v594_v31 }
 0x213   : > { %v596_v32 = vpop.f32.mrf.mxu3 }
 0x214   : > { %607 = vst.msk [vmem:[#allocation2 + $0x18] sm:$0xff] %vm424_vm0, %v596_v32 }
 0x21b   : > { %v599_v33 = vpop.f32.mrf.mxu3 }
 0x21c   : > { %608 = vst.msk [vmem:[#allocation2 + $0x20] sm:$0xff] %vm424_vm0, %v599_v33 }
 0x223   : > { %v601_v34 = vpop.f32.mrf.mxu3 }
 0x224   : > { %609 = vst.msk [vmem:[#allocation2 + $0x28] sm:$0xff] %vm424_vm0, %v601_v34 }
 0x225 PF: > { %v1142_v35 = vor.u32 %v1703_v1, %v1698_v0  ;;  %s1868_s18 = scalar_lea.vmem [#allocation4], %s1668_s16  ;;  %v612_v38 = vld [vmem:[#allocation2] sm:$0xff]  ;;  %v613_v39 = vld [vmem:[#allocation2 + $0x8] sm:$0xff]  ;;  %v614_v41 = vld [vmem:[#allocation2 + $0x10] sm:$0xff]  ;;  %vm651_vm1 = vcmask 130048   ;;  %vm866_vm2 = vcmask 130112  }
 0x226   : > { %v610_v36 = vld [vmem:[%s1868_s18] sm:$0xff]  ;;  %s1869_s20 = smov %s1868_s18  ;;  %v615_v42 = vld [vmem:[#allocation2 + $0x18] sm:$0xff]  ;;  %vm874_vm3 = vcmask 1041409   ;;  %vm876_vm4 = vcmask 1042434   ;;  %vm879_vm5 = vcmask 124928   ;;  %vm920_vm6 = vcmask 10240  }
 0x227   : > { %v611_v37 = vld [vmem:[%s1869_s20 + $0x8] sm:$0xff]  ;;  %v618_v40 = vmul.f32 %v612_v38, %v610_v36  ;;  %668 = vmatpush.bf16.msra.mxu0 %v1142_v35  ;;  %1160 = vmatpush.bf16.msra.mxu2 %v1142_v35  ;;  %v620_v44 = vmul.f32 %v614_v41, %v610_v36  ;;  %v616_v54 = vld [vmem:[#allocation2 + $0x20] sm:$0xff]  ;;  %vm916_vm7 = vcmask 16384   ;;  %s1870_s4 = sld [smem:[#allocation21_spill]] (!%p1116_p12) }
 0x228   : > { %v619_v43 = vmul.f32 %v613_v39, %v611_v37  ;;  %v621_v45 = vmul.f32 %v615_v42, %v611_v37  ;;  %814 = vmatpush.bf16.msra.mxu1 %v1142_v35  ;;  %1161 = vmatpush.bf16.msra.mxu3 %v1142_v35  ;;  %v622_v58 = vmul.f32 %v616_v54, %v610_v36  ;;  %v861_v42 = vlaneseq }
 0x229   : > { %v624_v46 = vpack.c.bf16 %v618_v40, %v618_v40  ;;  %v626_v48 = vpack.c.bf16 %v620_v44, %v620_v44 }
 0x22a   : > { %v625_v47 = vpack.c.bf16 %v619_v43, %v619_v43  ;;  %v627_v49 = vpack.c.bf16 %v621_v45, %v621_v45  ;;  %v628_v60 = vpack.c.bf16 %v622_v58, %v622_v58  ;;  %v862_v43 = vand.u32 127, %v861_v42 }
 0x22b   : > { %v636_v50 = vunpack.c.l.b16 %v624_v46  ;;  %v638_v52 = vunpack.c.l.b16 %v626_v48  ;;  %v617_v55 = vld [vmem:[#allocation2 + $0x28] sm:$0xff] }
 0x22c   : > { %v637_v51 = vunpack.c.l.b16 %v625_v47  ;;  %v639_v53 = vunpack.c.l.b16 %v627_v49  ;;  %v623_v59 = vmul.f32 %v617_v55, %v611_v37  ;;  %v640_v62 = vunpack.c.l.b16 %v628_v60 }
 0x22d   : > { %v864_v45 = vadd.s32 4294967288, %v862_v43 }
 0x22e   : > { %v642_v56 = vpack.c.b16 %v637_v51, %v636_v50  ;;  %v643_v57 = vpack.c.b16 %v639_v53, %v638_v52  ;;  %v629_v61 = vpack.c.bf16 %v623_v59, %v623_v59 }
 0x230   : > { %1143 = vmatmul.msk.bf16.vlgmr.msra.gmra.mxu0 %vm651_vm1, %v642_v56  ;;  %1144 = vmatmul.msk.bf16.vlgmr.msra.gmra.mxu2 %vm651_vm1, %v643_v57  ;;  %v641_v63 = vunpack.c.l.b16 %v629_v61  ;;  %v918_v61 = vld [vmem:[%s1691_s21] sm:$0x7] }
 0x232   : > { %v644_v0 = vpack.c.b16 %v641_v63, %v640_v62 }
 0x240   : > { %1145 = vmatmul.msk.bf16.gmra.mxu2 %vm651_vm1, %v644_v0 }
 0x2ad   : > { %v670_v1 = vpop.f32.mrf.mxu0 }
 0x2ae   : > { %685 = vxpose.xlu2.b32.start [1/2] (short) (narrow) %v670_v1, 16 }
 0x2b3   : > { %v675_v2 = vpop.f32.mrf.mxu2 }
 0x2b4   : > { %719 = vxpose.xlu0.b32.start [1/2] (short) (narrow) %v675_v2, 16 }
 0x2b5   : > { %v672_v3 = vpop.f32.mrf.mxu0 }
 0x2b6   : > { %686 = vxpose.xlu2.b32.end [2/2] (short) (narrow) %v672_v3, 16 }
 0x2bb   : > { %v677_v4 = vpop.f32.mrf.mxu2 }
 0x2bc   : > { %720 = vxpose.xlu0.b32.end [2/2] (short) (narrow) %v677_v4, 16 }
 0x2c3   : > { %v680_v5 = vpop.f32.mrf.mxu2 }
 0x2c4   : > { %754 = vxpose.xlu1.b32.start [1/2] (short) (narrow) %v680_v5, 16 }
 0x2cb   : > { %v682_v6 = vpop.f32.mrf.mxu2 }
 0x2cc   : > { %755 = vxpose.xlu1.b32.end [2/2] (short) (narrow) %v682_v6, 16 }
 0x347   : > { %v701_v7 = vpop.trf.xlu2 }
 0x348   : > { %717 = vst.msk [vmem:[#allocation3] sm:$0xff] %vm651_vm1, %v701_v7 }
 0x34f   : > { %v702_v8 = vpop.trf.xlu2  ;;  %v789_v9 = vld [vmem:[#allocation3] sm:$0xff] }
 0x350   : > { %718 = vst.msk [vmem:[#allocation3 + $0x8] sm:$0xff] %vm651_vm1, %v702_v8 }
 0x357   : > { %v790_v10 = vld [vmem:[#allocation3 + $0x8] sm:$0xff] }
 0x358   : > { %v735_v11 = vpop.trf.xlu0  ;;  %v795_v12 = vpack.c.bf16 %v790_v10, %v789_v9 }
 0x359   : > { %752 = vst.msk [vmem:[#allocation3 + $0x10] sm:$0xff] %vm651_vm1, %v735_v11 }
 0x35a   : > { %1146 = vmatmul.msk.bf16.vlgmr.msra.gmra.mxu1 %vm651_vm1, %v795_v12 }
 0x360   : > { %v736_v13 = vpop.trf.xlu0  ;;  %v791_v15 = vld [vmem:[#allocation3 + $0x10] sm:$0xff] }
 0x361   : > { %753 = vst.msk [vmem:[#allocation3 + $0x18] sm:$0xff] %vm651_vm1, %v736_v13 }
 0x368   : > { %v770_v14 = vpop.trf.xlu1  ;;  %v792_v16 = vld [vmem:[#allocation3 + $0x18] sm:$0xff] }
 0x369   : > { %787 = vst.msk [vmem:[#allocation3 + $0x20] sm:$0xff] %vm651_vm1, %v770_v14  ;;  %v796_v17 = vpack.c.bf16 %v792_v16, %v791_v15 }
 0x36b   : > { %1147 = vmatmul.msk.bf16.vlgmr.msra.gmra.mxu3 %vm651_vm1, %v796_v17 }
 0x370   : > { %v771_v18 = vpop.trf.xlu1  ;;  %v793_v19 = vld [vmem:[#allocation3 + $0x20] sm:$0xff] }
 0x371   : > { %788 = vst.msk [vmem:[#allocation3 + $0x28] sm:$0xff] %vm651_vm1, %v771_v18 }
 0x378   : > { %v794_v20 = vld [vmem:[#allocation3 + $0x28] sm:$0xff] }
 0x379   : > { %v797_v21 = vpack.c.bf16 %v794_v20, %v793_v19 }
 0x37b   : > { %1148 = vmatmul.msk.bf16.gmra.mxu3 %vm651_vm1, %v797_v21 }
 0x3d7   : > { %v816_v22 = vpop.f32.mrf.mxu1 }
 0x3d8   : > { %v831_v23 = vmax.f32 %v816_v22, 0.0 }
 0x3da   : > { %v837_v24 = vsel %vm651_vm1, %v831_v23, 0.0 }
 0x3db   : > { %838 = vadd.xlane.f32.xlu0 %v837_v24 }
 0x3df   : > { %v818_v25 = vpop.f32.mrf.mxu1 }
 0x3e0   : > { %v832_v26 = vmax.f32 %v818_v25, 0.0 }
 0x3e2   : > { %v840_v27 = vsel %vm651_vm1, %v832_v26, 0.0 }
 0x3e3   : > { %841 = vadd.xlane.f32.xlu1 %v840_v27 }
 0x3ee   : > { %v821_v28 = vpop.f32.mrf.mxu3 }
 0x3ef   : > { %v833_v29 = vmax.f32 %v821_v28, 0.0 }
 0x3f1   : > { %v843_v30 = vsel %vm651_vm1, %v833_v29, 0.0 }
 0x3f2   : > { %844 = vadd.xlane.f32.xlu2 %v843_v30 }
 0x3f6   : > { %v823_v31 = vpop.f32.mrf.mxu3 }
 0x3f7   : > { %v834_v32 = vmax.f32 %v823_v31, 0.0 }
 0x3f9   : > { %v846_v33 = vsel %vm651_vm1, %v834_v32, 0.0 }
 0x3fa   : > { %847 = vadd.xlane.f32.xlu1 %v846_v33 }
 0x3fe   : > { %v826_v34 = vpop.f32.mrf.mxu3 }
 0x3ff   : > { %v835_v35 = vmax.f32 %v826_v34, 0.0 }
 0x401   : > { %v849_v36 = vsel %vm651_vm1, %v835_v35, 0.0 }
 0x402   : > { %850 = vadd.xlane.f32.xlu1 %v849_v36 }
 0x406   : > { %v828_v37 = vpop.f32.mrf.mxu3 }
 0x407   : > { %v836_v38 = vmax.f32 %v828_v37, 0.0 }
 0x409   : > { %v852_v39 = vsel %vm651_vm1, %v836_v38, 0.0 }
 0x40a   : > { %853 = vadd.xlane.f32.xlu1 %v852_v39 }
 0x44e   : > { %v839_v46 = vpop.xlane.xlu0 %838 }
 0x44f   : > { %v863_v49 = vperm.slane %v839_v46, %v862_v43 }
 0x456   : > { %v842_v40 = vpop.xlane.xlu1 %841 }
 0x457   : > { %v865_v50 = vperm.slane %v842_v40, %v864_v45 }
 0x459   : > { %v867_v56 = vsel %vm866_vm2, %v865_v50, %v863_v49 }
 0x465   : > { %v845_v47 = vpop.xlane.xlu2 %844 }
 0x466   : > { %v868_v51 = vperm.slane %v845_v47, %v862_v43 }
 0x46d   : > { %v848_v41 = vpop.xlane.xlu1 %847 }
 0x46e   : > { %v869_v48 = vperm.slane %v848_v41, %v864_v45 }
 0x470   : > { %v870_v52 = vsel %vm866_vm2, %v869_v48, %v868_v51 }
 0x471   : > { %v875_v58 = vsel %vm874_vm3, %v870_v52, %v867_v56 }
 0x475   : > { %v851_v44 = vpop.xlane.xlu1 %850 }
 0x476   : > { %v871_v54 = vperm.slane %v851_v44, %v862_v43 }
 0x47d   : > { %v854_v53 = vpop.xlane.xlu1 %853 }
 0x47e   : > { %v872_v55 = vperm.slane %v854_v53, %v864_v45 }
 0x480   : > { %v873_v57 = vsel %vm866_vm2, %v872_v55, %v871_v54 }
 0x481   : > { %v877_v59 = vsel %vm876_vm4, %v873_v57, %v875_v58 }
 0x482   : > { %v880_v60 = vsel %vm879_vm5, %v877_v59, 0.0 }
 0x483   : > { %881 = vadd.xlane.f32.xlu0 %v880_v60 }
 0x4f6   : > { %v882_v62 = vpop.xlane.xlu0 %881 }
 0x4f7   : > { %v883_v63 = vmul.f32 0.00390625, %v882_v62 }
 0x4f9   : > { %v919_v0 = vmul.f32 %v918_v61, %v883_v63  ;;  %884 = vxpose.xlu2.b32.start.end [1/1] (short) (narrow) %v883_v63, 8 }
 0x4fb   : > { %v921_v1 = vsel %vm920_vm6, %v919_v0, 0.0 }
 0x4fc   : > { %v922_v2 = vrot.slane %v921_v1, 4 }
 0x4fe   : > { %v923_v3 = vadd.f32 %v922_v2, %v921_v1 }
 0x500   : > { %v924_v4 = vrot.slane %v923_v3, 2 }
 0x502   : > { %v925_v5 = vadd.f32 %v924_v4, %v923_v3 }
 0x504   : > { %v926_v6 = vrot.slane %v925_v5, 1 }
 0x506   : > { %v927_v7 = vadd.f32 %v926_v6, %v925_v5 }
 0x58f   : > { %930 = sbr.rel (%p1116_p12) target bundleno = 1430 (0x596), region = 60 }
 0x592   : > { %v900_v8 = vpop.trf.xlu2 }
 0x593   : > { %917 = vst.msk [vmem:[%s387_s19] sm:$0x1] %vm916_vm7, %v900_v8 }
 0x594   : > { %v931_v9 = vld [vmem:[%s1870_s4] sm:$0x1]  ;;  %vm932_vm8 = vcmask 8192  }
 0x595   : > { %933 = vst.msk [vmem:[%s1716_s23] sm:$0x1] %vm932_vm8, %v931_v9 }
 0x596 PF: > { %vm936_vm9 = vcmask 8192   ;;  %s1872_s30 = sld [smem:[#allocation22_spill]]  ;;  %s959_s19 = sshll.u32 %s1716_s23, 4  ;;  %s960_s19 = int_to_ptr.vmem [resolvable:$true] %s959_s19 }
 0x597   : > { %s946_s12 = scalar_lea.sflag [#allocation6], %s1676_s29 }
 0x59c   : > { %v934_v10 = vld [vmem:[%s1716_s23] sm:$0x1]  ;;  %s1873_s14 = smov %s1872_s30  ;;  %s957_s27 = scalar_lea.hbm %s1872_s30, %s1452_s8 }
 0x59d   : > { %v935_v11 = vadd.f32 %v934_v10, %v927_v7  ;;  %s961_s22 = sshll.u32 %s957_s27, 4  ;;  %s1358_s21 = scalar_lea.hbm %s1873_s14, 2  ;;  %s962_s22 = int_to_ptr.hbm [resolvable:$true] %s961_s22 }
 0x59e   : > { %s1352_s18 = sshra.s32 %s962_s22, 4  ;;  %s1353_s18 = int_to_ptr.hbm [resolvable:$true] %s1352_s18 }
 0x59f   : > { %937 = vst.msk [vmem:[%s1716_s23] sm:$0x1] %vm936_vm9, %v935_v11  ;;  %s1354_s20 = scalar_lea.hbm %s1353_s18, 1  ;;  %p1359_p4 = scmp.lt.s32.totalorder %s1353_s18, %s1873_s14 }
 0x5a0   : > { %p1355_p13 = scmp.ne.s32.totalorder %s1353_s18, %s1354_s20  ;;  %p1360_p6 = scmp.lt.s32.totalorder %s1358_s21, %s1354_s20 }
 0x5a2   : > { %p1356_p1 = pnand %p1355_p13, %p1643_p0  ;;  %p1361_p9 = por %p1360_p6, %p1359_p4 }
 0x5a4   : > { %p1357_p3 = pneg %p1356_p1 }
 0x5a6   : > { %p1362_p10 = pnand %p1361_p9, %p1357_p3 }
 0x5a8   : > { %1365 = shalt.err (!%p1362_p10)
}
 0x5a9   : > { %1169 = dma.vmem_to_hbm [thread:$0]  (%p1643_p0), %s960_s19, 16, %s962_s22, %s946_s12  }
 0x5aa PF: > { %s1874_s29 = sld [smem:[#allocation13_spill]]  ;;  %p1183_p2 = scmp.ge.s32.totalorder %s1464_s11, 2 }
 0x5ac   : > { %p1179_p5 = pnand %p1183_p2, %p1650_p11 }
 0x5ae   : > { %p1180_p7 = pneg %p1179_p5 }
 0x5b0   : > { %s983_s23 = sand.u32 1, %s1874_s29  }
 0x5b1   : > { %s984_s4 = scalar_lea.sflag [#allocation6], %s983_s23 }
 0x5b2   : > { %1419 = dma.done.wait (%p1180_p7), %s984_s4, 16  }
 0x5b3   : > { %1421 = vsyncadd (%p1180_p7), %s984_s4, 4294967280  ;;  %s27_s11 = sadd.s32 1, %s1464_s11   ;;  %s1875_s17 = sld [smem:[#allocation14_spill]] }
 0x5b4   : > { %p24_p8 = scmp.ge.s32.totalorder %s27_s11, 10   ;;  %s1876_s29 = sld [smem:[#allocation17_spill]] }
 0x5b5   : > { %s1877_s30 = sld [smem:[#allocation15_spill]]  ;;  %s1880_s24 = smov %s1428_s25 }
 0x5b6   : > { %s1878_s9 = sld [smem:[#allocation16_spill]]  ;;  %s1881_s25 = smov %s1432_s26 }
 0x5b7   : > { %s1879_s19 = sld [smem:[#allocation18_spill]]  ;;  %s1882_s26 = smov %s1655_s15 }
 0x5b8   : > { %s1883_s27 = smov %s1440_s28  ;;  %s1885_s8 = smov %s1460_s10 }
 0x5b9   : > { %s1884_s28 = smov %s1875_s17  ;;  %26 = sbr.rel (!%p24_p8) target bundleno = 15 (0xf), region = 129 }
 0x5bd   : > { %s1886_s10 = smov %s1879_s19 }
 0x5be   :  { %989 = vsyncpa [#allocation5], 1 }
 0x5bf   :  { %991 = vsyncpa [#allocation5 + $0x1], 1 }
 0x5c0   :  { %992 = vsyncpa [#allocation8], 1 }
 0x5c1   :  { %994 = vsyncpa [#allocation8 + $0x1], 1 }
 0x5c2   :  { %995 = vsyncpa [#allocation6], 1 }
 0x5c3   :  { %997 = vsyncpa [#allocation6 + $0x1], 1 }

</bundles_post_ra>
